<compile_context>
chip_gen: v7x
topology: tpu7x:2x2x1
jax: 0.10.0
libtpu: 0.0.40
codegen_flags: <defaults>
</compile_context>

<pallas_src>
import jax
import jax.numpy as jnp
from jax.experimental import pallas as pl
from jax.experimental.pallas import tpu as pltpu

_LANE = 128     # vreg lane width (last dim)
_SUBLANE = 8    # vreg sublane width (second-to-last dim)


def _round_up(n, m):
    return (n + m - 1) // m * m


def _three_layer_kernel(x_ref, w1_ref, b1_ref, w3_ref, b3_ref, o_ref):
    """sigmoid(relu(relu(x@W1+b1)@W1+b1)@W3+b3), fused in one VMEM-resident pass.

    MXU inputs cast to bf16 (full rate on v5e/v6e/v7x MXUs), accumulation in
    f32 via preferred_element_type; all elementwise math stays f32.
    """
    w1 = w1_ref[...].astype(jnp.bfloat16)
    w3 = w3_ref[...].astype(jnp.bfloat16)
    b1 = b1_ref[...]
    b3 = b3_ref[...]

    h = jnp.dot(x_ref[...].astype(jnp.bfloat16), w1,
                preferred_element_type=jnp.float32) + b1
    h = jnp.maximum(h, 0.0)

    # linear1 reused, exactly as in the PyTorch forward().
    h = jnp.dot(h.astype(jnp.bfloat16), w1,
                preferred_element_type=jnp.float32) + b1
    h = jnp.maximum(h, 0.0)

    y = jnp.dot(h.astype(jnp.bfloat16), w3,
                preferred_element_type=jnp.float32) + b3

    # Numerically-stable sigmoid; exp + reciprocal both route to the EUP slot.
    e = jnp.exp(-jnp.abs(y))
    inv = pl.reciprocal(1.0 + e, approx=True)
    o_ref[...] = jnp.where(y >= 0.0, inv, e * inv).astype(o_ref.dtype)


def three_layer_net(x, w1, b1, w3, b3, *, block_b=512):
    """Runs the fused forward pass. Pads features to lane multiples (128) and
    batch to sublane/tile multiples; padding is sliced off before returning."""
    B, D_in = x.shape
    H = w1.shape[1]
    D_out = w3.shape[1]
    if w1.shape[0] != D_in or H != D_in:
        raise ValueError("forward() applies linear1 twice => D_in == H1 == H2 required")
    if b1.shape != (1, H) or w3.shape[0] != H or b3.shape != (1, D_out):
        raise ValueError("inconsistent parameter shapes")

    Dp = _round_up(D_in, _LANE)
    Op = _round_up(D_out, _LANE)

    use_grid = B > block_b
    if use_grid:
        n_tiles = pl.cdiv(B, block_b)
        Bp = n_tiles * block_b
    else:
        Bp = _round_up(B, _SUBLANE)

    # Zero padding is semantics-preserving here: padded weight rows multiply
    # zero activation columns, padded activation columns stay 0 through ReLU,
    # and padded output columns are dropped by the final slice.
    x_p = jnp.pad(x, ((0, Bp - B), (0, Dp - D_in)))
    w1_p = jnp.pad(w1, ((0, Dp - D_in), (0, Dp - H)))
    b1_p = jnp.pad(b1, ((0, 0), (0, Dp - H)))
    w3_p = jnp.pad(w3, ((0, Dp - H), (0, Op - D_out)))
    b3_p = jnp.pad(b3, ((0, 0), (0, Op - D_out)))

    out_shape = jax.ShapeDtypeStruct((Bp, Op), jnp.float32)

    if not use_grid:
        # Small batch: no grid at all -> single invocation, whole arrays in VMEM.
        y_p = pl.pallas_call(
            _three_layer_kernel,
            out_shape=out_shape,
            in_specs=[pl.BlockSpec(memory_space=pltpu.MemorySpace.VMEM)] * 5,
            out_specs=pl.BlockSpec(memory_space=pltpu.MemorySpace.VMEM),
        )(x_p, w1_p, b1_p, w3_p, b3_p)
    else:
        # Large batch: tile over batch rows; weights/biases stay VMEM-resident
        # across all grid steps (index_map -> block (0, 0)). "parallel" lets
        # v7x shard the batch axis across its 2 TensorCores (neutral on v5e/v6e).
        y_p = pl.pallas_call(
            _three_layer_kernel,
            out_shape=out_shape,
            grid=(Bp // block_b,),
            in_specs=[
                pl.BlockSpec((block_b, Dp), lambda i: (i, 0)),
                pl.BlockSpec((Dp, Dp), lambda i: (0, 0)),
                pl.BlockSpec((1, Dp), lambda i: (0, 0)),
                pl.BlockSpec((Dp, Op), lambda i: (0, 0)),
                pl.BlockSpec((1, Op), lambda i: (0, 0)),
            ],
            out_specs=pl.BlockSpec((block_b, Op), lambda i: (i, 0)),
            compiler_params=pltpu.CompilerParams(
                dimension_semantics=("parallel",),
            ),
        )(x_p, w1_p, b1_p, w3_p, b3_p)

    return y_p[:B, :D_out]


def init_linear(key, fan_in, fan_out):
    # Mirrors torch.nn.Linear init: U(-1/sqrt(fan_in), 1/sqrt(fan_in)).
    # Weight returned already transposed to [in, out] for the x @ W layout.
    kw, kb = jax.random.split(key)
    bound = 1.0 / jnp.sqrt(fan_in)
    w = jax.random.uniform(kw, (fan_in, fan_out), jnp.float32, -bound, bound)
    b = jax.random.uniform(kb, (1, fan_out), jnp.float32, -bound, bound)
    return w, b


def _reference_f32(x, w1, b1, w3, b3):
    h = jnp.maximum(x @ w1 + b1, 0.0)
    h = jnp.maximum(h @ w1 + b1, 0.0)
    return jax.nn.sigmoid(h @ w3 + b3)


def _reference_bf16_mxu(x, w1, b1, w3, b3):
    # Matches the kernel's bf16-input / f32-accumulate matmuls.
    def mm(a, w):
        return jnp.dot(a.astype(jnp.bfloat16), w.astype(jnp.bfloat16),
                       preferred_element_type=jnp.float32)
    h = jnp.maximum(mm(x, w1) + b1, 0.0)
    h = jnp.maximum(mm(h, w1) + b1, 0.0)
    return jax.nn.sigmoid(mm(h, w3) + b3)


if __name__ == "__main__":
    # Shapes implied by forward(): linear1 applied twice => D_in == H1 == H2.
    B, D_in, H1, H2, D_out = 8, 32, 32, 32, 16

    key = jax.random.PRNGKey(0)
    kx, k1, k2, k3 = jax.random.split(key, 4)

    x = jax.random.normal(kx, (B, D_in), jnp.float32)
    w1, b1 = init_linear(k1, D_in, H1)
    w2, b2 = init_linear(k2, H1, H2)   # linear2: defined but unused in forward()
    w3, b3 = init_linear(k3, H2, D_out)

    # Small-batch (gridless) path.
    y = jax.block_until_ready(three_layer_net(x, w1, b1, w3, b3))
    assert y.shape == (B, D_out)
    assert jnp.allclose(y, _reference_bf16_mxu(x, w1, b1, w3, b3), atol=5e-3), \
        "mismatch vs bf16-MXU reference"
    assert jnp.allclose(y, _reference_f32(x, w1, b1, w3, b3), atol=3e-2), \
        "mismatch vs f32 reference"

    # Large-batch (batch-tiled, weights-resident) path with a non-multiple batch.
    Bb = 1000
    xb = jax.random.normal(jax.random.PRNGKey(1), (Bb, D_in), jnp.float32)
    yb = jax.block_until_ready(three_layer_net(xb, w1, b1, w3, b3, block_b=256))
    assert yb.shape == (Bb, D_out)
    assert jnp.allclose(yb, _reference_bf16_mxu(xb, w1, b1, w3, b3), atol=5e-3), \
        "mismatch vs bf16-MXU reference (tiled path)"

    print("KERNEL_OK")
</pallas_src>

<mosaic_0001>
module attributes {stable_mosaic.version = 11 : i64} {
  func.func @_three_layer_kernel(%arg0: memref<8x128xf32, #tpu.memory_space<vmem>>, %arg1: memref<128x128xf32, #tpu.memory_space<vmem>>, %arg2: memref<1x128xf32, #tpu.memory_space<vmem>>, %arg3: memref<128x128xf32, #tpu.memory_space<vmem>>, %arg4: memref<1x128xf32, #tpu.memory_space<vmem>>, %arg5: memref<8x128xf32, #tpu.memory_space<vmem>>) attributes {dimension_semantics = [], scalar_prefetch = 0 : i64, scratch_operands = 0 : i64, tpu.core_type = #tpu.core_type<tc>} {
    %c0 = arith.constant 0 : index
    %c0_0 = arith.constant 0 : index
    %0 = vector.load %arg1[%c0, %c0_0] : memref<128x128xf32, #tpu.memory_space<vmem>>, vector<128x128xf32>
    %1 = arith.truncf %0 : vector<128x128xf32> to vector<128x128xbf16>
    %c0_1 = arith.constant 0 : index
    %c0_2 = arith.constant 0 : index
    %2 = vector.load %arg3[%c0_1, %c0_2] : memref<128x128xf32, #tpu.memory_space<vmem>>, vector<128x128xf32>
    %3 = arith.truncf %2 : vector<128x128xf32> to vector<128x128xbf16>
    %c0_3 = arith.constant 0 : index
    %c0_4 = arith.constant 0 : index
    %4 = vector.load %arg2[%c0_3, %c0_4] : memref<1x128xf32, #tpu.memory_space<vmem>>, vector<1x128xf32>
    %c0_5 = arith.constant 0 : index
    %c0_6 = arith.constant 0 : index
    %5 = vector.load %arg4[%c0_5, %c0_6] : memref<1x128xf32, #tpu.memory_space<vmem>>, vector<1x128xf32>
    %c0_7 = arith.constant 0 : index
    %c0_8 = arith.constant 0 : index
    %6 = vector.load %arg0[%c0_7, %c0_8] : memref<8x128xf32, #tpu.memory_space<vmem>>, vector<8x128xf32>
    %7 = arith.truncf %6 : vector<8x128xf32> to vector<8x128xbf16>
    %cst = arith.constant dense<0.000000e+00> : vector<8x128xf32>
    %8 = tpu.matmul %7, %1, %cst {dimension_numbers = #tpu.dot_dimension_numbers<[1], [0], [0], [1], [0, 0, 1, 1], [], []>} : vector<8x128xbf16>, vector<128x128xbf16>, vector<8x128xf32> -> vector<8x128xf32>
    %9 = vector.broadcast %4 : vector<1x128xf32> to vector<8x128xf32>
    %10 = arith.addf %8, %9 : vector<8x128xf32>
    %cst_9 = arith.constant 0.000000e+00 : f32
    %11 = vector.broadcast %cst_9 : f32 to vector<8x128xf32>
    %12 = arith.maximumf %10, %11 : vector<8x128xf32>
    %13 = arith.truncf %12 : vector<8x128xf32> to vector<8x128xbf16>
    %cst_10 = arith.constant dense<0.000000e+00> : vector<8x128xf32>
    %14 = tpu.matmul %13, %1, %cst_10 {dimension_numbers = #tpu.dot_dimension_numbers<[1], [0], [0], [1], [0, 0, 1, 1], [], []>} : vector<8x128xbf16>, vector<128x128xbf16>, vector<8x128xf32> -> vector<8x128xf32>
    %15 = vector.broadcast %4 : vector<1x128xf32> to vector<8x128xf32>
    %16 = arith.addf %14, %15 : vector<8x128xf32>
    %cst_11 = arith.constant 0.000000e+00 : f32
    %17 = vector.broadcast %cst_11 : f32 to vector<8x128xf32>
    %18 = arith.maximumf %16, %17 : vector<8x128xf32>
    %19 = arith.truncf %18 : vector<8x128xf32> to vector<8x128xbf16>
    %cst_12 = arith.constant dense<0.000000e+00> : vector<8x128xf32>
    %20 = tpu.matmul %19, %3, %cst_12 {dimension_numbers = #tpu.dot_dimension_numbers<[1], [0], [0], [1], [0, 0, 1, 1], [], []>} : vector<8x128xbf16>, vector<128x128xbf16>, vector<8x128xf32> -> vector<8x128xf32>
    %21 = vector.broadcast %5 : vector<1x128xf32> to vector<8x128xf32>
    %22 = arith.addf %20, %21 : vector<8x128xf32>
    %23 = math.absf %22 : vector<8x128xf32>
    %cst_13 = arith.constant 0.000000e+00 : f32
    %24 = vector.broadcast %cst_13 : f32 to vector<8x128xf32>
    %25 = arith.subf %24, %23 : vector<8x128xf32>
    %26 = math.exp %25 : vector<8x128xf32>
    %cst_14 = arith.constant 1.000000e+00 : f32
    %27 = vector.broadcast %cst_14 : f32 to vector<8x128xf32>
    %28 = arith.addf %27, %26 : vector<8x128xf32>
    %29 = tpu.reciprocal %28 {approx = true} : vector<8x128xf32> -> vector<8x128xf32>
    %cst_15 = arith.constant 0.000000e+00 : f32
    %30 = vector.broadcast %cst_15 : f32 to vector<8x128xf32>
    %31 = arith.cmpf oge, %22, %30 : vector<8x128xf32>
    %32 = arith.mulf %26, %29 : vector<8x128xf32>
    %33 = arith.select %31, %29, %32 : vector<8x128xi1>, vector<8x128xf32>
    %c0_16 = arith.constant 0 : index
    %c0_17 = arith.constant 0 : index
    %34 = vector.load %arg5[%c0_16, %c0_17] : memref<8x128xf32, #tpu.memory_space<vmem>>, vector<8x128xf32>
    tpu.vector_store %arg5[%c0_16, %c0_17], %33 {strides = array<i32>} : memref<8x128xf32, #tpu.memory_space<vmem>>, vector<8x128xf32>,
    return
  }
}

</mosaic_0001>

<bundles_post_ra>
// kernel: tpu_custom_call.1
= control target key start
LH: loop header
LB: loop body
LE: loop exit
PB: predicated region body
PF: predicated region fallthrough
CT: control target
= control target key end

     0   :  { %10 = vsyncpa [#allocation3], 0  ;;  %s598_s0 = inlined_call_operand.hbm [shape: f32[8,128], index: 0, kind: input, shape index: {}]   ;;  %s599_s1 = inlined_call_operand.hbm [shape: f32[128,128], index: 1, kind: input, shape index: {}]   ;;  %s600_s2 = inlined_call_operand.vmem [shape: f32[1,128], index: 2, kind: input, shape index: {}]   ;;  %s601_s3 = inlined_call_operand.hbm [shape: f32[128,128], index: 3, kind: input, shape index: {}]   ;;  %s602_s4 = inlined_call_operand.vmem [shape: f32[1,128], index: 4, kind: input, shape index: {}]   ;;  %s603_s5 = inlined_call_operand.hbm [shape: f32[8,128], index: 5, kind: output, shape index: {}]  }
   0x1   :  { %11 = vsyncpa [#allocation6], 0 }
   0x2   :  { %12 = vsyncpa [#allocation4], 0  ;;  %s470_s18 = smov [#allocation5]   ;;  %s376_s22 = scalar_lea.hbm %s599_s1, 2048 }
   0x3   :  { %s28_s19 = sshll.u32 %s470_s18, 4  ;;  %p377_p0 = scmp.ne.s32.totalorder %s599_s1, %s376_s22  ;;  %s29_s19 = int_to_ptr.vmem [resolvable:$true] %s28_s19 }
   0x4   :  { %p380_p1 = scmp.lt.u32.totalorder %s376_s22, %s599_s1 }
   0x6   :  { %p382_p2 = pnand %p380_p1, %p377_p0 }
   0x8   :  { %385 = shalt.err (!%p382_p2)
}
   0x9   :  { %s386_s27 = scalar_lea.vmem %s29_s19, 2048  ;;  %p391_p4 = scmp.lt.s32.totalorder %s29_s19, %s29_s19 }
   0xa   :  { %p387_p3 = scmp.ne.s32.totalorder %s29_s19, %s386_s27  ;;  %p392_p5 = scmp.lt.s32.totalorder %s386_s27, %s386_s27 }
   0xc   :  { %p393_p6 = por %p392_p5, %p391_p4 }
   0xe   :  { %p394_p7 = pnand %p393_p6, %p387_p3 }
  0x10   :  { %397 = shalt.err (!%p394_p7)
}
  0x11   :  { %s471_s28 = smov 128   ;;  %s472_s29 = smov 8  }
  0x12   :  { %34 = dma.hbm_to_vmem [thread:$0]  %s599_s1, 2048, %s29_s19, [#allocation6], %s471_s28, %s471_s28, %s472_s29  }
  0x13   :  { %s473_s7 = smov [#allocation2]   ;;  %s474_s9 = smov [#allocation7]  }
  0x14   :  { %s19_s8 = sshll.u32 %s473_s7, 4  ;;  %s42_s10 = sshll.u32 %s474_s9, 4  ;;  %s20_s8 = int_to_ptr.vmem [resolvable:$true] %s19_s8  ;;  %s43_s10 = int_to_ptr.vmem [resolvable:$true] %s42_s10 }
  0x15   :  { %s398_s13 = scalar_lea.hbm %s598_s0, 128 }
  0x16   :  { %p399_p8 = scmp.ne.s32.totalorder %s598_s0, %s398_s13  ;;  %p402_p9 = scmp.lt.u32.totalorder %s398_s13, %s598_s0 }
  0x18   :  { %p404_p10 = pnand %p402_p9, %p399_p8 }
  0x1a   :  { %407 = shalt.err (!%p404_p10)
}
  0x1b   :  { %s408_s1 = scalar_lea.vmem %s20_s8, 128  ;;  %p413_p12 = scmp.lt.s32.totalorder %s20_s8, %s20_s8 }
  0x1c   :  { %p409_p11 = scmp.ne.s32.totalorder %s20_s8, %s408_s1  ;;  %p414_p13 = scmp.lt.s32.totalorder %s408_s1, %s408_s1 }
  0x1e   :  { %p415_p0 = por %p414_p13, %p413_p12 }
  0x20   :  { %p416_p1 = pnand %p415_p0, %p409_p11 }
  0x22   :  { %419 = shalt.err (!%p416_p1)
}
  0x23   :  { %22 = dma.hbm_to_vmem [thread:$0]  %s598_s0, 128, %s20_s8, [#allocation3]  }
  0x24   :  { %s420_s22 = scalar_lea.hbm %s601_s3, 2048 }
  0x25   :  { %p421_p2 = scmp.ne.s32.totalorder %s601_s3, %s420_s22  ;;  %p424_p3 = scmp.lt.u32.totalorder %s420_s22, %s601_s3 }
  0x27   :  { %p426_p4 = pnand %p424_p3, %p421_p2 }
  0x29   :  { %429 = shalt.err (!%p426_p4)
}
  0x2a   :  { %s430_s27 = scalar_lea.vmem %s43_s10, 2048  ;;  %p435_p6 = scmp.lt.s32.totalorder %s43_s10, %s43_s10 }
  0x2b   :  { %p431_p5 = scmp.ne.s32.totalorder %s43_s10, %s430_s27  ;;  %p436_p7 = scmp.lt.s32.totalorder %s430_s27, %s430_s27 }
  0x2d   :  { %p437_p8 = por %p436_p7, %p435_p6 }
  0x2f   :  { %p438_p9 = pnand %p437_p8, %p431_p5 }
  0x31   :  { %441 = shalt.err (!%p438_p9)
}
  0x32   :  { %48 = dma.hbm_to_vmem [thread:$0]  %s601_s3, 2048, %s43_s10, [#allocation6], %s471_s28, %s471_s28, %s472_s29  }
  0x33   :  { %464 = dma.done.wait [#allocation3], 128  }
  0x34   :  { %465 = vsyncadd [#allocation3], 4294967168 }
  0x35   :  { %466 = dma.done.wait [#allocation6], 4096  }
  0x36   :  { %467 = vsyncadd [#allocation6], 4294963200  ;;  %v475_v0 = vmov 0.0   ;;  %vm476_vm0 = vmmov 0   ;;  %v61_v1 = vld [vmem:[#allocation5] sm:$0xff]  ;;  %v62_v2 = vld [vmem:[#allocation5 + $0x8] sm:$0xff] }
  0x37   :  { %304 = vmatprep.subr.bf16.mxu0 %v475_v0  ;;  %320 = vmatprep.mubr.msk.bf16.mxu0 %vm476_vm0, %v475_v0  ;;  %v63_v3 = vld [vmem:[#allocation5 + $0x10] sm:$0xff]  ;;  %v77_v4 = vpack.c.bf16 %v62_v2, %v61_v1  ;;  %v64_v5 = vld [vmem:[#allocation5 + $0x18] sm:$0xff]  ;;  %v65_v7 = vld [vmem:[#allocation5 + $0x20] sm:$0xff]  ;;  %s477_s6 = smov [#allocation8]  }
  0x38   :  { %324 = vmatprep.subr.bf16.mxu1 %v475_v0  ;;  %340 = vmatprep.mubr.msk.bf16.mxu1 %vm476_vm0, %v475_v0  ;;  %v78_v6 = vpack.c.bf16 %v64_v5, %v63_v3  ;;  %v66_v8 = vld [vmem:[#allocation5 + $0x28] sm:$0xff]  ;;  %v67_v10 = vld [vmem:[#allocation5 + $0x30] sm:$0xff]  ;;  %v68_v11 = vld [vmem:[#allocation5 + $0x38] sm:$0xff]  ;;  %s265_s7 = sshll.u32 %s477_s6, 4  ;;  %s266_s7 = int_to_ptr.vmem [resolvable:$true] %s265_s7 }
  0x39   :  { %305 = vmatpush3.bf16.msra.mxu0 %v77_v4  ;;  %325 = vmatpush3.bf16.msra.mxu1 %v77_v4  ;;  %v79_v9 = vpack.c.bf16 %v66_v8, %v65_v7  ;;  %v80_v12 = vpack.c.bf16 %v68_v11, %v67_v10  ;;  %v69_v13 = vld [vmem:[#allocation5 + $0x40] sm:$0xff]  ;;  %v70_v14 = vld [vmem:[#allocation5 + $0x48] sm:$0xff]  ;;  %v71_v16 = vld [vmem:[#allocation5 + $0x50] sm:$0xff]  ;;  %p447_p11 = scmp.lt.s32.totalorder %s266_s7, %s266_s7 }
  0x3a   :  { %306 = vmatprep.subr.bf16.mxu0 %v475_v0  ;;  %326 = vmatprep.subr.bf16.mxu1 %v475_v0  ;;  %v81_v15 = vpack.c.bf16 %v70_v14, %v69_v13  ;;  %v72_v17 = vld [vmem:[#allocation5 + $0x58] sm:$0xff]  ;;  %v73_v19 = vld [vmem:[#allocation5 + $0x60] sm:$0xff]  ;;  %v74_v20 = vld [vmem:[#allocation5 + $0x68] sm:$0xff] }
  0x3b   :  { %v82_v18 = vpack.c.bf16 %v72_v17, %v71_v16  ;;  %v83_v21 = vpack.c.bf16 %v74_v20, %v73_v19  ;;  %v75_v22 = vld [vmem:[#allocation5 + $0x70] sm:$0xff]  ;;  %v76_v23 = vld [vmem:[#allocation5 + $0x78] sm:$0xff]  ;;  %v85_v27 = vld [vmem:[#allocation7] sm:$0xff] }
  0x3c   :  { %v84_v24 = vpack.c.bf16 %v76_v23, %v75_v22  ;;  %v111_v25 = vld [vmem:[#allocation2] sm:$0xff]  ;;  %v86_v28 = vld [vmem:[#allocation7 + $0x8] sm:$0xff]  ;;  %v87_v29 = vld [vmem:[#allocation7 + $0x10] sm:$0xff] }
  0x3d   :  { %307 = vmatpush3.bf16.msra.mxu0 %v78_v6  ;;  %327 = vmatpush3.bf16.msra.mxu1 %v78_v6  ;;  %v112_v26 = vpack.c.bf16 %v111_v25, %v111_v25  ;;  %v101_v30 = vpack.c.bf16 %v86_v28, %v85_v27  ;;  %v88_v31 = vld [vmem:[#allocation7 + $0x18] sm:$0xff]  ;;  %v89_v33 = vld [vmem:[#allocation7 + $0x20] sm:$0xff]  ;;  %v90_v34 = vld [vmem:[#allocation7 + $0x28] sm:$0xff] }
  0x3e   :  { %308 = vmatprep.subr.bf16.mxu0 %v475_v0  ;;  %328 = vmatprep.subr.bf16.mxu1 %v475_v0  ;;  %v102_v32 = vpack.c.bf16 %v88_v31, %v87_v29  ;;  %v103_v35 = vpack.c.bf16 %v90_v34, %v89_v33  ;;  %v91_v36 = vld [vmem:[#allocation7 + $0x30] sm:$0xff]  ;;  %v92_v37 = vld [vmem:[#allocation7 + $0x38] sm:$0xff]  ;;  %v93_v39 = vld [vmem:[#allocation7 + $0x40] sm:$0xff] }
  0x3f   :  { %v104_v38 = vpack.c.bf16 %v92_v37, %v91_v36  ;;  %v94_v40 = vld [vmem:[#allocation7 + $0x48] sm:$0xff]  ;;  %v95_v42 = vld [vmem:[#allocation7 + $0x50] sm:$0xff]  ;;  %v96_v43 = vld [vmem:[#allocation7 + $0x58] sm:$0xff] }
  0x40   :  { %v105_v41 = vpack.c.bf16 %v94_v40, %v93_v39  ;;  %v106_v44 = vpack.c.bf16 %v96_v43, %v95_v42  ;;  %v275_v45 = vld [vmem:[%s600_s2] ss:$0 sm:$0xff]  ;;  %v97_v53 = vld [vmem:[#allocation7 + $0x60] sm:$0xff]  ;;  %v98_v54 = vld [vmem:[#allocation7 + $0x68] sm:$0xff] }
  0x41   :  { %309 = vmatpush3.bf16.msra.mxu0 %v79_v9  ;;  %329 = vmatpush3.bf16.msra.mxu1 %v79_v9  ;;  %v107_v55 = vpack.c.bf16 %v98_v54, %v97_v53  ;;  %v99_v56 = vld [vmem:[#allocation7 + $0x70] sm:$0xff]  ;;  %v100_v57 = vld [vmem:[#allocation7 + $0x78] sm:$0xff] }
  0x42   :  { %310 = vmatprep.subr.bf16.mxu0 %v475_v0  ;;  %330 = vmatprep.subr.bf16.mxu1 %v475_v0  ;;  %v108_v58 = vpack.c.bf16 %v100_v57, %v99_v56  ;;  %v276_v3 = vld [vmem:[%s602_s4] ss:$0 sm:$0xff]  ;;  %s442_s4 = scalar_lea.vmem %s266_s7, 128 }
  0x43   :  { %p443_p10 = scmp.ne.s32.totalorder %s266_s7, %s442_s4  ;;  %p448_p12 = scmp.lt.s32.totalorder %s442_s4, %s442_s4 }
  0x45   :  { %311 = vmatpush3.bf16.msra.mxu0 %v80_v12  ;;  %331 = vmatpush3.bf16.msra.mxu1 %v80_v12  ;;  %p449_p13 = por %p448_p12, %p447_p11 }
  0x46   :  { %312 = vmatprep.subr.bf16.mxu0 %v475_v0  ;;  %332 = vmatprep.subr.bf16.mxu1 %v475_v0 }
  0x47   :  { %p450_p0 = pnand %p449_p13, %p443_p10 }
  0x49   :  { %313 = vmatpush3.bf16.msra.mxu0 %v81_v15  ;;  %333 = vmatpush3.bf16.msra.mxu1 %v81_v15 }
  0x4a   :  { %314 = vmatprep.subr.bf16.mxu0 %v475_v0  ;;  %334 = vmatprep.subr.bf16.mxu1 %v475_v0 }
  0x4d   :  { %315 = vmatpush3.bf16.msra.mxu0 %v82_v18  ;;  %335 = vmatpush3.bf16.msra.mxu1 %v82_v18 }
  0x4e   :  { %316 = vmatprep.subr.bf16.mxu0 %v475_v0  ;;  %336 = vmatprep.subr.bf16.mxu1 %v475_v0 }
  0x51   :  { %317 = vmatpush3.bf16.msra.mxu0 %v83_v21  ;;  %337 = vmatpush3.bf16.msra.mxu1 %v83_v21 }
  0x52   :  { %318 = vmatprep.subr.bf16.mxu0 %v475_v0  ;;  %338 = vmatprep.subr.bf16.mxu1 %v475_v0 }
  0x55   :  { %319 = vmatpush3.bf16.msra.mxu0 %v84_v24  ;;  %339 = vmatpush3.bf16.msra.mxu1 %v84_v24 }
  0x56   :  { %344 = vmatprep.subr.bf16.mxu0 %v475_v0 }
  0x58   :  { %321 = vmatmul.mubr.bf16.vlgmr.msra.gmra.mrb[0].mxu0 %v112_v26 }
  0x59   :  { %360 = vmatprep.mubr.msk.bf16.mxu0 %vm476_vm0, %v475_v0  ;;  %345 = vmatpush3.bf16.msra.mxu0 %v101_v30 }
  0x5a   :  { %346 = vmatprep.subr.bf16.mxu0 %v475_v0 }
  0x5d   :  { %347 = vmatpush3.bf16.msra.mxu0 %v102_v32 }
  0x5e   :  { %348 = vmatprep.subr.bf16.mxu0 %v475_v0 }
  0x61   :  { %349 = vmatpush3.bf16.msra.mxu0 %v103_v35 }
  0x62   :  { %350 = vmatprep.subr.bf16.mxu0 %v475_v0 }
  0x65   :  { %351 = vmatpush3.bf16.msra.mxu0 %v104_v38 }
  0x66   :  { %352 = vmatprep.subr.bf16.mxu0 %v475_v0 }
  0x69   :  { %353 = vmatpush3.bf16.msra.mxu0 %v105_v41 }
  0x6a   :  { %354 = vmatprep.subr.bf16.mxu0 %v475_v0 }
  0x6d   :  { %355 = vmatpush3.bf16.msra.mxu0 %v106_v44 }
  0x6e   :  { %356 = vmatprep.subr.bf16.mxu0 %v475_v0 }
  0x71   :  { %357 = vmatpush3.bf16.msra.mxu0 %v107_v55 }
  0x72   :  { %358 = vmatprep.subr.bf16.mxu0 %v475_v0 }
  0x75   :  { %359 = vmatpush3.bf16.msra.mxu0 %v108_v58 }
 0x12b   :  { %v153_v46 = vpop.f32.mrb[0].mxu0 }
 0x12c   :  { %v154_v47 = vadd.f32 %v275_v45, %v153_v46  ;;  %v322_v48 = vpop.f32.mrb[1].mxu0 }
 0x12d   :  { %v156_v49 = vpop.f32.mrb[2].mxu0 }
 0x12e   :  { %v159_v50 = vmax.f32 %v154_v47, 0.0  ;;  %v323_v51 = vpop.f32.mrb[3].mxu0 }
 0x130   :  { %v160_v52 = vpack.c.bf16 %v159_v50, %v159_v50 }
 0x132   :  { %341 = vmatmul.mubr.bf16.vlgmr.msra.gmra.mrb[0].mxu1 %v160_v52 }
 0x205   :  { %v195_v59 = vpop.f32.mrb[0].mxu1 }
 0x206   :  { %v196_v60 = vadd.f32 %v275_v45, %v195_v59  ;;  %v342_v61 = vpop.f32.mrb[1].mxu1 }
 0x207   :  { %v198_v62 = vpop.f32.mrb[2].mxu1 }
 0x208   :  { %v201_v63 = vmax.f32 %v196_v60, 0.0  ;;  %v343_v1 = vpop.f32.mrb[3].mxu1 }
 0x20a   :  { %v202_v2 = vpack.c.bf16 %v201_v63, %v201_v63 }
 0x20c   :  { %361 = vmatmul.mubr.bf16.vlgmr.msra.gmra.mrb[4].mxu0 %v202_v2 }
 0x2df   :  { %v243_v4 = vpop.f32.mrb[4].mxu0 }
 0x2e0   :  { %v244_v5 = vadd.f32 %v276_v3, %v243_v4  ;;  %v362_v6 = vpop.f32.mrb[5].mxu0 }
 0x2e1   :  { %v246_v0 = vpop.f32.mrb[6].mxu0 }
 0x2e2   :  { %v249_v7 = vand.u32 2147483647, %v244_v5  ;;  %v363_v8 = vpop.f32.mrb[7].mxu0  ;;  %vm255_vm1 = vcmp.ge.f32.partialorder %v244_v5, 0.0 }
 0x2e4   :  { %v250_v9 = vsub.f32 0.0, %v249_v7 }
 0x2e6   :  { %v251_v10 = vmul.f32 1.442695, %v250_v9 }
 0x2e8   :  { %372 = vpow2.f32 %v251_v10 }
 0x2f2   :  { %v373_v11 = vpop.eup %372 }
 0x2f3   :  { %v253_v12 = vadd.f32 1.0, %v373_v11 }
 0x2f5   :  { %374 = vrcp.f32 %v253_v12 }
 0x2ff   :  { %v375_v13 = vpop.eup %374 }
 0x300   :  { %v256_v14 = vmul.f32 %v375_v13, %v373_v11 }
 0x302   :  { %v257_v15 = vsel %vm255_vm1, %v375_v13, %v256_v14 }
 0x303   :  { %258 = vst [vmem:[#allocation8] sm:$0xff] %v257_v15 }
 0x304   :  { %453 = shalt.err (!%p450_p0)
}
 0x305   :  { %s454_s10 = scalar_lea.hbm %s603_s5, 128 }
 0x306   :  { %p455_p1 = scmp.ne.s32.totalorder %s603_s5, %s454_s10  ;;  %p458_p2 = scmp.lt.u32.totalorder %s454_s10, %s603_s5 }
 0x308   :  { %p460_p3 = pnand %p458_p2, %p455_p1 }
 0x30a   :  { %463 = shalt.err (!%p460_p3)
}
 0x30b   :  { %268 = dma.vmem_to_hbm [thread:$0]  %s266_s7, 128, %s603_s5, [#allocation4]  }
 0x30c   :  { %468 = dma.done.wait [#allocation4], 128  }
 0x30d   :  { %469 = vsyncadd [#allocation4], 4294967168 }
 0x30e   :  { %272 = vsyncpa [#allocation3], 1 }
 0x30f   :  { %273 = vsyncpa [#allocation6], 1 }
 0x310   :  { %274 = vsyncpa [#allocation4], 1 }

</bundles_post_ra>
